<compile_context>
chip_gen: v7x
topology: tpu7x:2x2x1
jax: 0.10.0
libtpu: 0.0.40
codegen_flags: <defaults>
</compile_context>

<pallas_src>
import functools

import jax
import jax.numpy as jnp
from jax import lax
from jax.experimental import pallas as pl
from jax.experimental.pallas import tpu as pltpu


# ---------------------------------------------------------------------------
# helpers
# ---------------------------------------------------------------------------
def _round_up(x, m):
    return ((x + m - 1) // m) * m


def _vmem_capacity_bytes():
    try:
        return int(pltpu.get_tpu_info().vmem_capacity_bytes)
    except Exception:
        return 64 * 1024 * 1024          # conservative fallback (v7x per-TC VMEM)


def _choose_row_tile(n_rows, vocab, itemsize):
    """Row tile sized by a byte budget per pipeline buffer (~8 MiB on 128 MiB
    parts, ~4 MiB on v7x's 64 MiB), keeping >= 2 grid steps so both v7x
    TensorCores get work and the pipeline has something to overlap."""
    cap = _vmem_capacity_bytes()
    per_buffer_budget = (8 << 20) if cap >= (96 << 20) else (4 << 20)
    tr = per_buffer_budget // max(1, vocab * itemsize)
    tr = max(8, (tr // 8) * 8)
    rows_padded = _round_up(n_rows, 8)
    if tr >= rows_padded:
        # split into (at least) two tiles unless the problem is a single vreg row
        tr = rows_padded if rows_padded <= 8 else _round_up((rows_padded + 1) // 2, 8)
    tr = min(tr, rows_padded)
    grid = -(-n_rows // tr)              # cdiv
    # honest VMEM request: 2 pipeline buffers for the logp stream + KB-scale
    # side columns + headroom for Mosaic internal scratch.
    need = 2 * tr * vocab * itemsize + 8 * tr * 4 + (4 << 20)
    vmem_limit = int(min(cap * 3 // 4, max(2 * need, 16 << 20)))
    return tr, grid, vmem_limit


# ---------------------------------------------------------------------------
# Kernel 1: per-token gather of -logp[target], greedy argmax preds,
#           masked -logp[pred], and a per-tile partial sum for the ML loss.
#           Grid-tiled over rows; row-tile axis is "parallel" (v7x: 2 TCs).
# ---------------------------------------------------------------------------
def token_stats_kernel(logp_ref, tgt_ref, mask_ref,
                       preds_ref, nllp_ref, ml_part_ref, *, total_rows):
    # Full-tile elementwise work in the tile's native dtype (bf16 stays bf16 on
    # v6e/v7x); only the (TR,1) reduced values are upcast to f32 so the loss
    # reductions keep f32 precision.
    lp = logp_ref[...]                          # (TR, V)
    tgt = tgt_ref[...]                          # (TR, 1)  int32
    msk = mask_ref[...].astype(jnp.float32)     # (TR, 1)  f32
    tr, v = lp.shape

    lane = lax.broadcasted_iota(jnp.int32, (tr, v), 1)

    # gather -logp[target] via one-hot select + lane reduce (single nonzero/row)
    lp_tgt = jnp.sum(jnp.where(lane == tgt, lp, jnp.zeros_like(lp)),
                     axis=1, keepdims=True).astype(jnp.float32)

    # greedy prediction = argmax over vocab (first max wins)
    # TODO(synk): replace the compare+select with a single lax.argmax lane
    # reduction once the Mosaic lowering supports argmax_p (saves 2 VALU passes).
    lp_max = jnp.max(lp, axis=1, keepdims=True)
    preds = jnp.min(jnp.where(lp == lp_max, lane, v), axis=1, keepdims=True)
    preds = jnp.minimum(preds, v - 1)           # stay in-vocab even for NaN rows
    lp_max = lp_max.astype(jnp.float32)

    # guard the ragged last tile (rows >= total_rows carry undefined block data)
    row = pl.program_id(0) * tr + lax.broadcasted_iota(jnp.int32, (tr, 1), 0)
    valid = row < total_rows

    preds_ref[...] = preds.astype(jnp.int32)
    # TODO(synk): emit preds/nllp lane-dense ((G, TR) blocks) via an XLU repack
    # to avoid masked vst on v5e; output bytes are small so kept column-shaped.
    nllp_ref[...] = jnp.where(valid, -lp_max * msk, 0.0)            # masked -logp[pred]
    ml_part_ref[0] = jnp.sum(jnp.where(valid, -lp_tgt * msk, 0.0), keepdims=True)


# ---------------------------------------------------------------------------
# Kernel 2: synthetic "InferSent" sentence encoder.  The embedding table is
#           VMEM-resident (no per-token HBM round trips / grid steps); token
#           ids and validity flags are scalar-prefetched into SMEM; each grid
#           step encodes a block of SENT_BLOCK sentences by max-pooling the
#           gathered rows over mask-valid positions only.
# ---------------------------------------------------------------------------
SENT_BLOCK = 8      # sentences per grid step -> (8, E) sublane-dense output block


def encode_kernel(tok_ref, valid_ref, emb_ref, code_ref, *, seq_len, sent_block):
    g = pl.program_id(0)
    e = code_ref.shape[-1]
    neg_inf = jnp.full((1, e), -jnp.inf, jnp.float32)

    for j in range(sent_block):                              # static unroll
        base = (g * sent_block + j) * seq_len

        def body(t, carry, base=base):
            acc, cnt = carry
            tok = tok_ref[base + t]                          # SMEM scalar read
            ok = valid_ref[base + t]                         # 0/1 int32
            row = emb_ref[pl.ds(tok, 1), :].astype(jnp.float32)   # (1, E) VMEM row
            acc = jnp.where(ok > 0, jnp.maximum(acc, row), acc)
            return acc, cnt + ok

        acc, cnt = lax.fori_loop(0, seq_len, body, (neg_inf, jnp.int32(0)),
                                 unroll=True)
        # sentences with no valid position fall back to a zero code (avoids
        # inf/NaN in the cosine-similarity norms downstream)
        code_ref[pl.ds(j, 1), :] = jnp.where(cnt > 0, acc, jnp.zeros_like(acc))


# ---------------------------------------------------------------------------
# Wrapper: full forward pass (sentence-level reward path).
# ---------------------------------------------------------------------------
def infersent_reward_forward(logp, target, mask, emb, *, alpha, tau_sent,
                             seq_per_img, scale_loss=False, scores=None):
    N, T, V = logp.shape
    target = target[:, :T].astype(jnp.int32)
    mask = mask[:, :T].astype(jnp.float32)
    token_valid = (mask > 0).astype(jnp.int32)         # pre-scaling validity flags
    if scale_loss and scores is not None:
        mask = mask * scores.astype(jnp.float32)       # (N,1) broadcast over T

    R = N * T
    logp_flat = logp.reshape(R, V)                     # keep caller dtype (f32 or bf16)
    tgt_flat = target.reshape(R, 1)
    mask_flat = mask.reshape(R, 1)

    itemsize = jnp.dtype(logp.dtype).itemsize
    TR, G, vmem_limit = _choose_row_tile(R, V, itemsize)
    # TODO(synk): for very large vocab (a single (TR,V) tile still too big) add
    # a vocab grid axis with carried max/argmax/sum state.

    preds_col, nllp_col, ml_parts = pl.pallas_call(
        functools.partial(token_stats_kernel, total_rows=R),
        out_shape=(jax.ShapeDtypeStruct((R, 1), jnp.int32),
                   jax.ShapeDtypeStruct((R, 1), jnp.float32),
                   jax.ShapeDtypeStruct((G, 1, 1), jnp.float32)),
        grid=(G,),
        in_specs=[pl.BlockSpec((TR, V), lambda i: (i, 0)),
                  pl.BlockSpec((TR, 1), lambda i: (i, 0)),
                  pl.BlockSpec((TR, 1), lambda i: (i, 0))],
        out_specs=(pl.BlockSpec((TR, 1), lambda i: (i, 0)),
                   pl.BlockSpec((TR, 1), lambda i: (i, 0)),
                   pl.BlockSpec((1, 1, 1), lambda i: (i, 0, 0))),
        compiler_params=pltpu.CompilerParams(
            dimension_semantics=("parallel",),          # shards row tiles across TCs
            vmem_limit_bytes=vmem_limit),
    )(logp_flat, tgt_flat, mask_flat)

    # get_ml_loss: sum(-logp[target] * mask) / sum(mask)   (tiny reduces stay in XLA)
    mask_sum = jnp.sum(mask)
    ml_output = jnp.sum(ml_parts) / mask_sum

    preds = preds_col.reshape(N, T)
    nll_pred = nllp_col.reshape(N, T)                  # already mask-weighted

    # get_scores(): InferSent similarities between greedy preds and references.
    # TODO(synk): the pretrained InferSent BiLSTM (torch.load of
    # infersent.allnli.pickle + GloVe) and string decode_sequence have no
    # in-script equivalent; replaced by a deterministic embedding-gather +
    # masked max-pool encoder with mean cosine group similarity.
    E = emb.shape[1]
    cap = _vmem_capacity_bytes()
    emb_t = emb                                        # never materialize an f32 HBM copy
    if (emb_t.size * jnp.dtype(emb_t.dtype).itemsize > cap // 2
            and emb_t.dtype == jnp.float32):
        emb_t = emb_t.astype(jnp.bfloat16)             # halve resident footprint (v7x 64 MiB)
    # TODO(synk): if the table still cannot fit VMEM, fall back to a manual
    # double-buffered make_async_copy row gather with emb left in pl.ANY.

    all_tok = jnp.clip(jnp.concatenate([target, preds], axis=0), 0, V - 1)
    all_tok = all_tok.astype(jnp.int32)                               # (2N, T)
    all_valid = jnp.concatenate([token_valid, token_valid], axis=0)   # (2N, T)

    S = 2 * N
    S_pad = _round_up(S, SENT_BLOCK)
    if S_pad != S:
        pad = S_pad - S
        all_tok = jnp.concatenate(
            [all_tok, jnp.zeros((pad, T), jnp.int32)], axis=0)
        all_valid = jnp.concatenate(
            [all_valid, jnp.zeros((pad, T), jnp.int32)], axis=0)
    tok_flat = all_tok.reshape(-1)
    valid_flat = all_valid.reshape(-1)

    table_bytes = emb_t.size * jnp.dtype(emb_t.dtype).itemsize
    enc_need = table_bytes + 2 * SENT_BLOCK * E * 4 + (4 << 20)
    enc_vmem_limit = int(min(cap * 3 // 4, max(enc_need + (8 << 20), 16 << 20)))

    codes = pl.pallas_call(
        functools.partial(encode_kernel, seq_len=T, sent_block=SENT_BLOCK),
        out_shape=jax.ShapeDtypeStruct((S_pad, E), jnp.float32),
        grid_spec=pltpu.PrefetchScalarGridSpec(
            num_scalar_prefetch=2,
            grid=(S_pad // SENT_BLOCK,),
            in_specs=[pl.BlockSpec(memory_space=pltpu.MemorySpace.VMEM)],
            out_specs=pl.BlockSpec((SENT_BLOCK, E), lambda g, tok, val: (g, 0))),
        compiler_params=pltpu.CompilerParams(
            dimension_semantics=("parallel",),
            vmem_limit_bytes=enc_vmem_limit),
    )(tok_flat, valid_flat, emb_t)
    codes = codes[:S]

    ref_c, hyp_c = codes[:N], codes[N:]
    n_groups = N // seq_per_img
    refs_g = ref_c.reshape(n_groups, seq_per_img, E)
    hyps_g = hyp_c.reshape(n_groups, seq_per_img, E)
    rn = refs_g / (jnp.linalg.norm(refs_g, axis=-1, keepdims=True) + 1e-8)
    hn = hyps_g / (jnp.linalg.norm(hyps_g, axis=-1, keepdims=True) + 1e-8)
    sims = jnp.einsum('gse,gre->gsr', hn, rn)          # cosine sim hypo vs group refs
    sent_scores = jnp.mean(sims, axis=-1).reshape(N)   # group_similarity

    if tau_sent:
        sent_scores = jnp.exp(sent_scores / tau_sent)
    else:
        sent_scores = jnp.where(jnp.sum(sent_scores) == 0.0,
                                sent_scores + 1.0, sent_scores)

    stats = {'sent_mean': jnp.mean(sent_scores), 'sent_std': jnp.std(sent_scores)}

    # RL-style reweighting: smooth_target is never materialized per token;
    # equivalent to sum(-logp[pred]*mask*repeat(sent_scores,T)) / sum(mask*repeat(...)).
    per_sent_nll = jnp.sum(nll_pred, axis=1)           # (N,)
    per_sent_mask = jnp.sum(mask, axis=1)              # (N,)
    rl_num = jnp.sum(per_sent_nll * sent_scores)
    rl_norm = jnp.sum(per_sent_mask * sent_scores)
    safe_norm = jnp.where(rl_norm > 0.0, rl_norm, 1.0)
    output = jnp.where(rl_norm > 0.0, rl_num / safe_norm, 0.0)

    final = alpha * output + (1.0 - alpha) * ml_output
    return ml_output, final, stats


if __name__ == "__main__":
    key = jax.random.PRNGKey(0)
    num_img, seq_per_img = 2, 5
    T, V, E = 8, 128, 128
    N = num_img * seq_per_img

    k1, k2, k3, k4 = jax.random.split(key, 4)
    logits = jax.random.normal(k1, (N, T, V), jnp.float32)
    logp = jax.nn.log_softmax(logits, axis=-1)                 # model log-probs
    target = jax.random.randint(k2, (N, T), 0, V, jnp.int32)
    mask = (jax.random.uniform(k3, (N, T)) > 0.2).astype(jnp.float32)
    mask = mask.at[:, 0].set(1.0)                              # guarantee sum(mask) > 0
    # deterministic synthetic "InferSent" embedding table
    emb = 0.1 * jax.random.normal(k4, (V, E), jnp.float32)

    ml, total, stats = infersent_reward_forward(
        logp, target, mask, emb,
        alpha=0.5, tau_sent=0.8, seq_per_img=seq_per_img, scale_loss=False)

    jax.block_until_ready((ml, total, stats['sent_mean'], stats['sent_std']))
    print("KERNEL_OK")
</pallas_src>

<mosaic_0001>
module attributes {stable_mosaic.version = 11 : i64} {
  func.func @token_stats_kernel(%arg0: i32, %arg1: memref<40x128xf32, #tpu.memory_space<vmem>>, %arg2: memref<40x1xi32, #tpu.memory_space<vmem>>, %arg3: memref<40x1xf32, #tpu.memory_space<vmem>>, %arg4: memref<40x1xi32, #tpu.memory_space<vmem>>, %arg5: memref<40x1xf32, #tpu.memory_space<vmem>>, %arg6: memref<1x1x1xf32, #tpu.memory_space<vmem>>) attributes {dimension_semantics = [#tpu.dimension_semantics<parallel>], iteration_bounds = array<i64: 2>, scalar_prefetch = 0 : i64, scratch_operands = 0 : i64, tpu.core_type = #tpu.core_type<tc>, window_params = [{transform_indices = @transform_0, window_bounds = array<i64: 40, 128>}, {transform_indices = @transform_1, window_bounds = array<i64: 40, 1>}, {transform_indices = @transform_2, window_bounds = array<i64: 40, 1>}, {transform_indices = @transform_3, window_bounds = array<i64: 40, 1>}, {transform_indices = @transform_4, window_bounds = array<i64: 40, 1>}, {transform_indices = @transform_5, window_bounds = array<i64: 1, 1, 1>}]} {
    %c0 = arith.constant 0 : index
    %c0_0 = arith.constant 0 : index
    %0 = vector.load %arg1[%c0, %c0_0] : memref<40x128xf32, #tpu.memory_space<vmem>>, vector<40x128xf32>
    %c0_1 = arith.constant 0 : index
    %c0_2 = arith.constant 0 : index
    %1 = vector.load %arg2[%c0_1, %c0_2] : memref<40x1xi32, #tpu.memory_space<vmem>>, vector<40x1xi32>
    %c0_3 = arith.constant 0 : index
    %c0_4 = arith.constant 0 : index
    %2 = vector.load %arg3[%c0_3, %c0_4] : memref<40x1xf32, #tpu.memory_space<vmem>>, vector<40x1xf32>
    %3 = tpu.iota {dimensions = array<i32: 1>} : vector<40x128xi32>
    %4 = vector.broadcast %1 : vector<40x1xi32> to vector<40x128xi32>
    %5 = arith.cmpi eq, %3, %4 : vector<40x128xi32>
    %cst = arith.constant 0.000000e+00 : f32
    %6 = vector.broadcast %cst : f32 to vector<40x128xf32>
    %7 = arith.select %5, %0, %6 : vector<40x128xi1>, vector<40x128xf32>
    %cst_5 = arith.constant dense<0.000000e+00> : vector<40xf32>
    %8 = vector.multi_reduction <add>, %7, %cst_5 [1] : vector<40x128xf32> to vector<40xf32>
    %9 = vector.shape_cast %8 : vector<40xf32> to vector<40x1xf32>
    %cst_6 = arith.constant dense<0xFF800000> : vector<40xf32>
    %10 = vector.multi_reduction <maximumf>, %0, %cst_6 [1] : vector<40x128xf32> to vector<40xf32>
    %11 = vector.shape_cast %10 : vector<40xf32> to vector<40x1xf32>
    %12 = vector.broadcast %11 : vector<40x1xf32> to vector<40x128xf32>
    %13 = arith.cmpf oeq, %0, %12 : vector<40x128xf32>
    %c128_i32 = arith.constant 128 : i32
    %14 = vector.broadcast %c128_i32 : i32 to vector<40x128xi32>
    %15 = arith.select %13, %3, %14 : vector<40x128xi1>, vector<40x128xi32>
    %cst_7 = arith.constant dense<2147483647> : vector<40xi32>
    %16 = vector.multi_reduction <minsi>, %15, %cst_7 [1] : vector<40x128xi32> to vector<40xi32>
    %17 = vector.shape_cast %16 : vector<40xi32> to vector<40x1xi32>
    %c127_i32 = arith.constant 127 : i32
    %18 = vector.broadcast %c127_i32 : i32 to vector<40x1xi32>
    %19 = arith.minsi %17, %18 : vector<40x1xi32>
    %c40_i32 = arith.constant 40 : i32
    %20 = arith.muli %arg0, %c40_i32 : i32
    %21 = tpu.iota {dimensions = array<i32: 0>} : vector<40x1xi32>
    %22 = vector.broadcast %20 : i32 to vector<40x1xi32>
    %23 = arith.addi %22, %21 : vector<40x1xi32>
    %c80_i32 = arith.constant 80 : i32
    %24 = vector.broadcast %c80_i32 : i32 to vector<40x1xi32>
    %25 = arith.cmpi slt, %23, %24 : vector<40x1xi32>
    %c0_8 = arith.constant 0 : index
    %c0_9 = arith.constant 0 : index
    %26 = vector.load %arg4[%c0_8, %c0_9] : memref<40x1xi32, #tpu.memory_space<vmem>>, vector<40x1xi32>
    tpu.vector_store %arg4[%c0_8, %c0_9], %19 {strides = array<i32>} : memref<40x1xi32, #tpu.memory_space<vmem>>, vector<40x1xi32>,
    %cst_10 = arith.constant 0.000000e+00 : f32
    %27 = vector.broadcast %cst_10 : f32 to vector<40x1xf32>
    %28 = arith.subf %27, %11 : vector<40x1xf32>
    %29 = arith.mulf %28, %2 : vector<40x1xf32>
    %cst_11 = arith.constant 0.000000e+00 : f32
    %30 = vector.broadcast %cst_11 : f32 to vector<40x1xf32>
    %31 = arith.select %25, %29, %30 : vector<40x1xi1>, vector<40x1xf32>
    %c0_12 = arith.constant 0 : index
    %c0_13 = arith.constant 0 : index
    %32 = vector.load %arg5[%c0_12, %c0_13] : memref<40x1xf32, #tpu.memory_space<vmem>>, vector<40x1xf32>
    tpu.vector_store %arg5[%c0_12, %c0_13], %31 {strides = array<i32>} : memref<40x1xf32, #tpu.memory_space<vmem>>, vector<40x1xf32>,
    %cst_14 = arith.constant 0.000000e+00 : f32
    %33 = vector.broadcast %cst_14 : f32 to vector<40x1xf32>
    %34 = arith.subf %33, %9 : vector<40x1xf32>
    %35 = arith.mulf %34, %2 : vector<40x1xf32>
    %cst_15 = arith.constant 0.000000e+00 : f32
    %36 = vector.broadcast %cst_15 : f32 to vector<40x1xf32>
    %37 = arith.select %25, %35, %36 : vector<40x1xi1>, vector<40x1xf32>
    %38 = vector.shape_cast %37 : vector<40x1xf32> to vector<1x40x1xf32>
    %cst_16 = arith.constant dense<0.000000e+00> : vector<1xf32>
    %39 = vector.multi_reduction <add>, %38, %cst_16 [1, 2] : vector<1x40x1xf32> to vector<1xf32>
    %40 = vector.shape_cast %39 : vector<1xf32> to vector<1x1x1xf32>
    %41 = vector.extract %40[0, 0, 0] : f32 from vector<1x1x1xf32>
    %42 = vector.broadcast %41 : f32 to vector<1x1xf32>
    %c0_17 = arith.constant 0 : index
    %c0_18 = arith.constant 0 : index
    %c0_19 = arith.constant 0 : index
    %43 = vector.load %arg6[%c0_17, %c0_18, %c0_19] : memref<1x1x1xf32, #tpu.memory_space<vmem>>, vector<1x1x1xf32>
    %44 = vector.shape_cast %43 : vector<1x1x1xf32> to vector<1x1xf32>
    %45 = vector.shape_cast %42 : vector<1x1xf32> to vector<1x1x1xf32>
    tpu.vector_store %arg6[%c0_17, %c0_18, %c0_19], %45 {strides = array<i32>} : memref<1x1x1xf32, #tpu.memory_space<vmem>>, vector<1x1x1xf32>,
    return
  }
  func.func @transform_0(%arg0: i32) -> (i32, i32) {
    %c0_i32 = arith.constant 0 : i32
    %c0_i32_0 = arith.constant 0 : i32
    return %arg0, %c0_i32 : i32, i32
  }
  func.func @transform_1(%arg0: i32) -> (i32, i32) {
    %c0_i32 = arith.constant 0 : i32
    %c0_i32_0 = arith.constant 0 : i32
    return %arg0, %c0_i32 : i32, i32
  }
  func.func @transform_2(%arg0: i32) -> (i32, i32) {
    %c0_i32 = arith.constant 0 : i32
    %c0_i32_0 = arith.constant 0 : i32
    return %arg0, %c0_i32 : i32, i32
  }
  func.func @transform_3(%arg0: i32) -> (i32, i32) {
    %c0_i32 = arith.constant 0 : i32
    %c0_i32_0 = arith.constant 0 : i32
    return %arg0, %c0_i32 : i32, i32
  }
  func.func @transform_4(%arg0: i32) -> (i32, i32) {
    %c0_i32 = arith.constant 0 : i32
    %c0_i32_0 = arith.constant 0 : i32
    return %arg0, %c0_i32 : i32, i32
  }
  func.func @transform_5(%arg0: i32) -> (i32, i32, i32) {
    %c0_i32 = arith.constant 0 : i32
    %c0_i32_0 = arith.constant 0 : i32
    %c0_i32_1 = arith.constant 0 : i32
    return %arg0, %c0_i32, %c0_i32_0 : i32, i32, i32
  }
}

</mosaic_0001>

<bundles_post_ra>
// kernel: tpu_custom_call.1
= control target key start
LH: loop header
LB: loop body
LE: loop exit
PB: predicated region body
PF: predicated region fallthrough
CT: control target
= control target key end

     0   :  { %s729_s18 = smov 0   ;;  %s906_s0 = inlined_call_operand.vmem [shape: f32[80,128], index: 0, kind: input, shape index: {}]   ;;  %s907_s1 = inlined_call_operand.vmem [shape: s32[80,1], index: 1, kind: input, shape index: {}]   ;;  %s908_s2 = inlined_call_operand.vmem [shape: f32[80,1], index: 2, kind: input, shape index: {}]   ;;  %s909_s3 = inlined_call_operand.vmem [shape: s32[80,1], index: 3, kind: output, shape index: {0}]   ;;  %s910_s4 = inlined_call_operand.vmem [shape: f32[80,1], index: 4, kind: output, shape index: {1}]   ;;  %s911_s5 = inlined_call_operand.vmem [shape: f32[2,1,1], index: 5, kind: output, shape index: {2}]  }
   0x1 LB: > { %s735_s19 = sadd.s32 4294967295, %s696_s18   ;;  %p669_p0 = scmp.ge.s32.totalorder %s696_s18, 1  ;;  %s696_s18 = sphi %s729_s18, %s16_s18  }
   0x2   : > { %p215_p1 = scmp.lt.s32.totalorder %s696_s18, 3 }
   0x4   : > { %p216_p2 = pnand %p669_p0, %p215_p1 }
   0x5   : > { %s261_s20 = smul.u32 (!%p216_p2), 5, %s735_s19  ;;  %v698_v0 = vmov (!%p216_p2), 0   ;;  %v309_v11 = vlaneseq (!%p216_p2)  ;;  %vm464_vm9 = vcmask (!%p216_p2), 7168   ;;  %p291_p4 = scmp.lt.s32.totalorder (!%p216_p2), %s735_s19, 1 }
   0x6   : > { %219 = sbr.rel (%p216_p2) target bundleno = 513 (0x201), region = 32  ;;  %689 = vset.pattern.permute.xlu1 (!%p216_p2), %v698_v0  ;;  %688 = vset.pattern.permute.xlu0 (!%p216_p2), %v698_v0 }
   0x7   : > { %p262_p3 = scmp.lt.s32.totalorder (!%p216_p2), %s261_s20, 9  ;;  %v759_v12 = vand.u32 (!%p216_p2), 127, %v309_v11  ;;  %v448_v23 = vshrl.u32 (!%p216_p2), %v309_v11, 7  ;;  %s446_s28 = smul.u32 (!%p216_p2), 40, %s735_s19 }
   0x9   : > { %v449_v24 = vadd.s32 (!%p216_p2), 8, %v448_v23  ;;  %v453_v25 = vstv (!%p216_p2), %s446_s28  ;;  %v450_v26 = vadd.s32 (!%p216_p2), 16, %v448_v23  ;;  %v451_v27 = vadd.s32 (!%p216_p2), 24, %v448_v23 }
   0xa   : > { %v776_v28 = vadd.s32 (!%p216_p2), %v453_v25, %v448_v23  ;;  %v452_v34 = vadd.s32 (!%p216_p2), 32, %v448_v23 }
   0xb   : > { %v778_v29 = vadd.s32 (!%p216_p2), %v453_v25, %v449_v24  ;;  %v780_v30 = vadd.s32 (!%p216_p2), %v453_v25, %v450_v26  ;;  %v785_v33 = vadd.s32 (!%p216_p2), %v453_v25, %v451_v27 }
   0xc   : > { %vm459_vm6 = vcmp.lt.s32.totalorder (!%p216_p2), %v776_v28, 80  ;;  %v808_v47 = vadd.s32 (!%p216_p2), %v453_v25, %v452_v34 }
   0xd   : > { %s913_s20 = smov (!%p262_p3, %s261_s20), 9  ;;  %vm460_vm7 = vcmp.lt.s32.totalorder %v778_v29, 80  ;;  %vm461_vm10 = vcmp.lt.s32.totalorder %v780_v30, 80  ;;  %vm462_vm11 = vcmp.lt.s32.totalorder %v785_v33, 80  ;;  %s915_s19 = smov (!%p291_p4, %s735_s19), 1 }
   0xe   : > { %s740_s21 = sshll.u32 %s913_s20, 3  ;;  %vm463_vm15 = vcmp.lt.s32.totalorder %v808_v47, 80  ;;  %s293_s15 = scalar_lea.vmem %s911_s5, %s915_s19 }
   0xf   : > { %s271_s24 = scalar_lea.vmem %s907_s1, %s740_s21  ;;  %s265_s27 = scalar_lea.vmem %s906_s0, %s740_s21 }
  0x10   : > { %v301_v1 = vld [vmem:[%s271_s24 + $0x10] sm:$0xff]  ;;  %v299_v2 = vld [vmem:[%s271_s24] sm:$0xff]  ;;  %v302_v3 = vld [vmem:[%s271_s24 + $0x18] sm:$0xff]  ;;  %s774_s6 = scalar_lea.vmem %s908_s2, %s740_s21  ;;  %s801_s9 = scalar_lea.vmem %s910_s4, %s740_s21 }
  0x11   : > { %318 = vperm.xlu1 %689, %v301_v1   ;;  %312 = vperm.xlu0 %688, %v299_v2   ;;  %v300_v4 = vld [vmem:[%s271_s24 + $0x8] sm:$0xff]  ;;  %v303_v5 = vld [vmem:[%s271_s24 + $0x20] sm:$0xff]  ;;  %v750_v8 = vld [vmem:[%s265_s27 + $0x10] sm:$0xff]  ;;  %s283_s12 = scalar_lea.vmem %s909_s3, %s740_s21 }
  0x12   : > { %v295_v6 = vld [vmem:[%s265_s27 + $0x8] sm:$0xff]  ;;  %v294_v7 = vld [vmem:[%s265_s27] sm:$0xff]  ;;  %v752_v9 = vld [vmem:[%s265_s27 + $0x18] sm:$0xff] }
  0x13   : > { %v756_v10 = vld [vmem:[%s265_s27 + $0x20] sm:$0xff]  ;;  %v783_v32 = vld [vmem:[%s774_s6 + $0x8] sm:$0xff]  ;;  %v306_v46 = vld [vmem:[%s774_s6 + $0x10] sm:$0xff] }
  0x14   : > { %v304_v37 = vld [vmem:[%s774_s6] sm:$0xff]  ;;  %v307_v52 = vld [vmem:[%s774_s6 + $0x18] sm:$0xff] }
  0x15   : > { %321 = vperm.xlu1 %689, %v302_v3   ;;  %315 = vperm.xlu0 %688, %v300_v4   ;;  %v308_v63 = vld [vmem:[%s774_s6 + $0x20] sm:$0xff] }
  0x19   : > { %324 = vperm.xlu0 %688, %v303_v5  }
  0x38   : > { %348 = vmax.xlane.f32.xlu0 %v295_v6 }
  0x39   : > { %346 = vmax.xlane.f32.xlu1 %v294_v7 }
  0x3c   : > { %350 = vmax.xlane.f32.xlu0 %v750_v8 }
  0x3d   : > { %352 = vmax.xlane.f32.xlu1 %v752_v9 }
  0x40   : > { %354 = vmax.xlane.f32.xlu0 %v756_v10 }
  0x90   : > { %v319_v13 = vpop.permute.xlu1 %318  ;;  %v313_v14 = vpop.permute.xlu0 %312 }
  0x91   : > { %vm328_vm0 = vcmp.eq.s32.totalorder %v759_v12, %v319_v13  ;;  %vm326_vm1 = vcmp.eq.s32.totalorder %v759_v12, %v313_v14 }
  0x92   : > { %v331_v15 = vsel %vm326_vm1, %v294_v7, 0.0  ;;  %v333_v18 = vsel %vm328_vm0, %v750_v8, 0.0 }
  0x93   : > { %336 = vadd.xlane.f32.xlu1 %v331_v15 }
  0x94   : > { %v322_v16 = vpop.permute.xlu1 %321  ;;  %v316_v17 = vpop.permute.xlu0 %315 }
  0x95   : > { %vm327_vm2 = vcmp.eq.s32.totalorder %v759_v12, %v316_v17  ;;  %vm329_vm3 = vcmp.eq.s32.totalorder %v759_v12, %v322_v16 }
  0x96   : > { %v332_v19 = vsel %vm327_vm2, %v295_v6, 0.0  ;;  %v334_v21 = vsel %vm329_vm3, %v752_v9, 0.0 }
  0x97   : > { %338 = vadd.xlane.f32.xlu0 %v332_v19  ;;  %340 = vadd.xlane.f32.xlu1 %v333_v18 }
  0x98   : > { %v325_v20 = vpop.permute.xlu0 %324 }
  0x99   : > { %vm330_vm4 = vcmp.eq.s32.totalorder %v759_v12, %v325_v20 }
  0x9a   : > { %v335_v22 = vsel %vm330_vm4, %v756_v10, 0.0 }
  0x9b   : > { %342 = vadd.xlane.f32.xlu0 %v334_v21  ;;  %344 = vadd.xlane.f32.xlu1 %v335_v22 }
  0xc5   : > { %v349_v31 = vpop.xlane.xlu0 %348 }
  0xc6   : > { %vm357_vm5 = vcmp.eq.f32.partialorder %v295_v6, %v349_v31  ;;  %v471_v35 = vsub.f32 0.0, %v349_v31  ;;  %v347_v36 = vpop.xlane.xlu1 %346 }
  0xc7   : > { %v791_v38 = vsel %vm357_vm5, %v759_v12, 128  ;;  %vm356_vm8 = vcmp.eq.f32.partialorder %v294_v7, %v347_v36  ;;  %v470_v39 = vsub.f32 0.0, %v347_v36 }
  0xc8   : > { %v794_v40 = vsel %vm356_vm8, %v759_v12, 128  ;;  %v381_v41 = vshra.s32 %v791_v38, 16  ;;  %v476_v42 = vmul.f32 %v471_v35, %v783_v32 }
  0xc9   : > { %v351_v43 = vpop.xlane.xlu0 %350  ;;  %v367_v44 = vshra.s32 %v794_v40, 16  ;;  %v475_v45 = vmul.f32 %v470_v39, %v304_v37 }
  0xca   : > { %vm358_vm12 = vcmp.eq.f32.partialorder %v750_v8, %v351_v43  ;;  %v472_v48 = vsub.f32 0.0, %v351_v43  ;;  %v353_v49 = vpop.xlane.xlu1 %352  ;;  %v811_v50 = vcvt.s32.f32 %v381_v41  ;;  %v481_v51 = vsel %vm460_vm7, %v476_v42, 0.0 }
  0xcb   : > { %v817_v53 = vsel %vm358_vm12, %v759_v12, 128  ;;  %vm359_vm13 = vcmp.eq.f32.partialorder %v752_v9, %v353_v49  ;;  %v473_v54 = vsub.f32 0.0, %v353_v49  ;;  %v820_v55 = vcvt.s32.f32 %v367_v44  ;;  %486 = vst.msk [vmem:[%s801_s9 + $0x8] sm:$0xff] %vm464_vm9, %v481_v51 }
  0xcc   : > { %v825_v56 = vsel %vm359_vm13, %v759_v12, 128  ;;  %384 = vmin.xlane.f32.xlu1 %v811_v50  ;;  %v395_v57 = vshra.s32 %v817_v53, 16  ;;  %v480_v58 = vsel %vm459_vm6, %v475_v45, 0.0  ;;  %v477_v59 = vmul.f32 %v472_v48, %v306_v46 }
  0xcd   : > { %370 = vmin.xlane.f32.xlu0 %v820_v55  ;;  %v355_v60 = vpop.xlane.xlu0 %354  ;;  %v409_v61 = vshra.s32 %v825_v56, 16  ;;  %485 = vst.msk [vmem:[%s801_s9] sm:$0xff] %vm464_vm9, %v480_v58  ;;  %v478_v62 = vmul.f32 %v473_v54, %v307_v52  ;;  %v380_v42 = vand.u32 65535, %v791_v38  ;;  %v366_v43 = vand.u32 65535, %v794_v40 }
  0xce   : > { %vm360_vm14 = vcmp.eq.f32.partialorder %v756_v10, %v355_v60  ;;  %v474_v0 = vsub.f32 0.0, %v355_v60  ;;  %v837_v1 = vcvt.s32.f32 %v395_v57  ;;  %v482_v2 = vsel %vm461_vm10, %v477_v59, 0.0 }
  0xcf   : > { %v842_v3 = vsel %vm360_vm14, %v759_v12, 128  ;;  %v844_v4 = vcvt.s32.f32 %v409_v61  ;;  %487 = vst.msk [vmem:[%s801_s9 + $0x10] sm:$0xff] %vm464_vm9, %v482_v2  ;;  %v483_v5 = vsel %vm462_vm11, %v478_v62, 0.0  ;;  %v382_v45 = vcvt.s32.f32 %v380_v42 }
  0xd0   : > { %v423_v6 = vshra.s32 %v842_v3, 16  ;;  %488 = vst.msk [vmem:[%s801_s9 + $0x18] sm:$0xff] %vm464_vm9, %v483_v5  ;;  %v479_v7 = vmul.f32 %v474_v0, %v308_v63  ;;  %v368_v33 = vcvt.s32.f32 %v366_v43  ;;  %v394_v47 = vand.u32 65535, %v817_v53 }
  0xd1   : > { %398 = vmin.xlane.f32.xlu0 %v837_v1  ;;  %412 = vmin.xlane.f32.xlu1 %v844_v4  ;;  %v408_v48 = vand.u32 65535, %v825_v56  ;;  %v422_v57 = vand.u32 65535, %v842_v3 }
  0xd2   : > { %v856_v8 = vcvt.s32.f32 %v423_v6  ;;  %v484_v9 = vsel %vm463_vm15, %v479_v7, 0.0  ;;  %v396_v54 = vcvt.s32.f32 %v394_v47 }
  0xd3   : > { %489 = vst.msk [vmem:[%s801_s9 + $0x20] sm:$0xff] %vm464_vm9, %v484_v9  ;;  %v410_v40 = vcvt.s32.f32 %v408_v48  ;;  %v424_v58 = vcvt.s32.f32 %v422_v57 }
  0xd5   : > { %426 = vmin.xlane.f32.xlu0 %v856_v8 }
 0x120   : > { %v337_v10 = vpop.xlane.xlu1 %336 }
 0x121   : > { %v490_v11 = vsub.f32 0.0, %v337_v10 }
 0x123   : > { %v495_v12 = vmul.f32 %v490_v11, %v304_v37 }
 0x124   : > { %v339_v13 = vpop.xlane.xlu0 %338  ;;  %v341_v14 = vpop.xlane.xlu1 %340 }
 0x125   : > { %v491_v15 = vsub.f32 0.0, %v339_v13  ;;  %v492_v16 = vsub.f32 0.0, %v341_v14  ;;  %v500_v17 = vsel %vm459_vm6, %v495_v12, 0.0 }
 0x126   : > { %v505_v26 = vsel %vm464_vm9, %v500_v17, 0.0 }
 0x127   : > { %v496_v18 = vmul.f32 %v491_v15, %v783_v32  ;;  %v497_v19 = vmul.f32 %v492_v16, %v306_v46 }
 0x128   : > { %v343_v20 = vpop.xlane.xlu0 %342  ;;  %v345_v21 = vpop.xlane.xlu1 %344 }
 0x129   : > { %v501_v22 = vsel %vm460_vm7, %v496_v18, 0.0  ;;  %v502_v23 = vsel %vm461_vm10, %v497_v19, 0.0  ;;  %v493_v24 = vsub.f32 0.0, %v343_v20  ;;  %v494_v25 = vsub.f32 0.0, %v345_v21 }
 0x12a   : > { %v506_v27 = vsel %vm464_vm9, %v501_v22, 0.0  ;;  %v508_v32 = vsel %vm464_vm9, %v502_v23, 0.0 }
 0x12b   : > { %v507_v31 = vadd.f32 %v506_v27, %v505_v26  ;;  %v498_v28 = vmul.f32 %v493_v24, %v307_v52  ;;  %v499_v34 = vmul.f32 %v494_v25, %v308_v63 }
 0x12d   : > { %v503_v35 = vsel %vm462_vm11, %v498_v28, 0.0  ;;  %v504_v29 = vsel %vm463_vm15, %v499_v34, 0.0  ;;  %v509_v36 = vadd.f32 %v508_v32, %v507_v31  ;;  %vm524_vm11 = vcmask 0  }
 0x12e   : > { %v510_v30 = vsel %vm464_vm9, %v503_v35, 0.0  ;;  %v512_v39 = vsel %vm464_vm9, %v504_v29, 0.0 }
 0x12f   : > { %v511_v37 = vadd.f32 %v510_v30, %v509_v36 }
 0x131   : > { %v513_v41 = vadd.f32 %v512_v39, %v511_v37 }
 0x133   : > { %514 = vadd.xlane.f32.xlu1 %v513_v41 }
 0x159   : > { %v385_v44 = vpop.xlane.xlu1 %384 }
 0x15a   : > { %v371_v46 = vpop.xlane.xlu0 %370  ;;  %vm386_vm0 = vcmp.eq.f32.partialorder %v811_v50, %v385_v44  ;;  %v391_v2 = vcvt.f32.s32 %v385_v44 }
 0x15b   : > { %v387_v49 = vsel %vm386_vm0, %v382_v45, inf  ;;  %vm372_vm1 = vcmp.eq.f32.partialorder %v820_v55, %v371_v46  ;;  %v377_v3 = vcvt.f32.s32 %v371_v46 }
 0x15c   : > { %388 = vmin.xlane.f32.xlu1 %v387_v49  ;;  %v373_v51 = vsel %vm372_vm1, %v368_v33, inf  ;;  %v392_v5 = vshll.u32 %v391_v2, 16 }
 0x15d   : > { %374 = vmin.xlane.f32.xlu0 %v373_v51 }
 0x15e   : > { %v399_v52 = vpop.xlane.xlu0 %398  ;;  %v413_v38 = vpop.xlane.xlu1 %412 }
 0x15f   : > { %vm400_vm2 = vcmp.eq.f32.partialorder %v837_v1, %v399_v52  ;;  %vm414_vm3 = vcmp.eq.f32.partialorder %v844_v4, %v413_v38  ;;  %v405_v6 = vcvt.f32.s32 %v399_v52  ;;  %v419_v7 = vcvt.f32.s32 %v413_v38 }
 0x160   : > { %v401_v50 = vsel %vm400_vm2, %v396_v54, inf  ;;  %v415_v53 = vsel %vm414_vm3, %v410_v40, inf }
 0x161   : > { %402 = vmin.xlane.f32.xlu0 %v401_v50  ;;  %416 = vmin.xlane.f32.xlu1 %v415_v53  ;;  %v406_v14 = vshll.u32 %v405_v6, 16  ;;  %v420_v15 = vshll.u32 %v419_v7, 16 }
 0x162   : > { %v427_v56 = vpop.xlane.xlu0 %426 }
 0x163   : > { %vm428_vm4 = vcmp.eq.f32.partialorder %v856_v8, %v427_v56  ;;  %v378_v8 = vshll.u32 %v377_v3, 16  ;;  %v433_v16 = vcvt.f32.s32 %v427_v56 }
 0x164   : > { %v429_v55 = vsel %vm428_vm4, %v424_v58, inf }
 0x165   : > { %430 = vmin.xlane.f32.xlu0 %v429_v55  ;;  %v434_v26 = vshll.u32 %v433_v16, 16 }
 0x1c0   : > { %v515_v59 = vpop.xlane.xlu1 %514 }
 0x1c1   : > { %v516_v60 = vrot.slane %v515_v59, 4 }
 0x1c3   : > { %v517_v61 = vadd.f32 %v516_v60, %v515_v59 }
 0x1c5   : > { %v518_v62 = vrot.slane %v517_v61, 2 }
 0x1c7   : > { %v519_v63 = vadd.f32 %v518_v62, %v517_v61 }
 0x1c9   : > { %v520_v0 = vrot.slane %v519_v63, 1 }
 0x1cb   : > { %v521_v1 = vadd.f32 %v520_v0, %v519_v63 }
 0x1cd   : > { %677 = vpush %v521_v1 }
 0x1e9   : > { %v389_v4 = vpop.xlane.xlu1 %388 }
 0x1ea   : > { %v390_v9 = vcvt.f32.s32 %v389_v4  ;;  %v375_v10 = vpop.xlane.xlu0 %374 }
 0x1eb   : > { %v376_v11 = vcvt.f32.s32 %v375_v10 }
 0x1ec   : > { %v393_v12 = vadd.s32 %v392_v5, %v390_v9 }
 0x1ed   : > { %v379_v13 = vadd.s32 %v378_v8, %v376_v11 }
 0x1ee   : > { %vm438_vm5 = vcmp.lt.s32.totalorder %v393_v12, 127  ;;  %v403_v17 = vpop.xlane.xlu0 %402  ;;  %v417_v18 = vpop.xlane.xlu1 %416 }
 0x1ef   : > { %v439_v19 = vsel %vm438_vm5, %v393_v12, 127  ;;  %vm436_vm6 = vcmp.lt.s32.totalorder %v379_v13, 127  ;;  %v404_v20 = vcvt.f32.s32 %v403_v17  ;;  %v418_v21 = vcvt.f32.s32 %v417_v18 }
 0x1f0   : > { %466 = vst.msk [vmem:[%s283_s12 + $0x8] sm:$0xff] %vm464_vm9, %v439_v19  ;;  %v437_v22 = vsel %vm436_vm6, %v379_v13, 127 }
 0x1f1   : > { %465 = vst.msk [vmem:[%s283_s12] sm:$0xff] %vm464_vm9, %v437_v22  ;;  %v407_v23 = vadd.s32 %v406_v14, %v404_v20  ;;  %v421_v24 = vadd.s32 %v420_v15, %v418_v21 }
 0x1f2   : > { %v431_v25 = vpop.xlane.xlu0 %430 }
 0x1f3   : > { %vm440_vm7 = vcmp.lt.s32.totalorder %v407_v23, 127  ;;  %vm442_vm8 = vcmp.lt.s32.totalorder %v421_v24, 127  ;;  %v432_v27 = vcvt.f32.s32 %v431_v25 }
 0x1f4   : > { %v441_v31 = vsel %vm440_vm7, %v407_v23, 127  ;;  %v443_v28 = vsel %vm442_vm8, %v421_v24, 127 }
 0x1f5   : > { %467 = vst.msk [vmem:[%s283_s12 + $0x10] sm:$0xff] %vm464_vm9, %v441_v31  ;;  %468 = vst.msk [vmem:[%s283_s12 + $0x18] sm:$0xff] %vm464_vm9, %v443_v28  ;;  %v435_v34 = vadd.s32 %v434_v26, %v432_v27 }
 0x1f7   : > { %vm444_vm10 = vcmp.lt.s32.totalorder %v435_v34, 127 }
 0x1f8   : > { %v445_v32 = vsel %vm444_vm10, %v435_v34, 127 }
 0x1f9   : > { %469 = vst.msk [vmem:[%s283_s12 + $0x20] sm:$0xff] %vm464_vm9, %v445_v32 }
 0x1fe   : > { %s678_s16 = spop %677 }
 0x1ff   : > { %v523_v35 = vstv %s678_s16 }
 0x200   : > { %525 = vst.msk [vmem:[%s293_s15] sm:$0x1] %vm524_vm11, %v523_v35 }
 0x201 PF: > { %s16_s18 = sadd.s32 1, %s696_s18  }
 0x202   : > { %p13_p5 = scmp.ge.s32.totalorder %s16_s18, 4  }
 0x204   :  { %15 = sbr.rel (!%p13_p5) target bundleno = 1 (0x1), region = 92 }

</bundles_post_ra>
